<compile_context>
chip_gen: v5e
topology: v5e:2x2
jax: 0.10.0
libtpu: 0.0.40
codegen_flags: <defaults>
</compile_context>

<pallas_src>
import functools

import jax
import jax.numpy as jnp
from jax.experimental import pallas as pl
from jax.experimental.pallas import tpu as pltpu


def _mlp_softmax_kernel(x_ref, p_ref, o_ref, m_ref, l_ref, *,
                        state_dim, n_actions, block_b, batch, needs_mask):
    pass_idx = pl.program_id(0)   # 0: accumulate softmax stats, 1: write probs
    blk_idx = pl.program_id(1)    # batch block index

    x = x_ref[...]                          # [Bblk, S]  natural layout
    xT = jnp.transpose(x)                   # [S, Bblk]  batch -> lane axis (XLU)
    P = p_ref[...]                          # [16+8+A, C] packed [W.T | b] rows

    # (row offset into slab, out_features, in_features, apply_relu)
    layers = ((0, 16, state_dim, True),
              (16, 8, 16, True),
              (24, n_actions, 8, False))

    h = xT
    for row0, o_dim, k_dim, relu in layers:
        W = P[row0:row0 + o_dim, :]         # [O, C]; column k_dim holds bias
        acc = W[:, k_dim:k_dim + 1]         # bias column -> accumulator init
        for k in range(k_dim):              # unrolled VPU FMAs (no MXU)
            acc = acc + W[:, k:k + 1] * h[k:k + 1, :]
        h = jnp.maximum(acc, 0.0) if relu else acc
    logits = h                               # [A, Bblk]

    @pl.when(jnp.logical_and(pass_idx == 0, blk_idx == 0))
    def _():
        m_ref[...] = jnp.full_like(m_ref, -jnp.inf)
        l_ref[...] = jnp.zeros_like(l_ref)

    @pl.when(pass_idx == 0)
    def _():
        lg = logits
        if needs_mask:                       # mask the padded tail of the last block
            col = jax.lax.broadcasted_iota(jnp.int32, logits.shape, 1)
            lg = jnp.where(col + blk_idx * block_b < batch, logits, -jnp.inf)
        m_prev = m_ref[...]
        m_new = jnp.maximum(m_prev, jnp.max(lg, axis=1, keepdims=True))
        l_ref[...] = (l_ref[...] * jnp.exp(m_prev - m_new)
                      + jnp.sum(jnp.exp(lg - m_new), axis=1, keepdims=True))
        m_ref[...] = m_new

    @pl.when(pass_idx == 1)
    def _():
        # Exact division: denominator is an [A, 1] vector, the divide is free.
        o_ref[...] = jnp.exp(logits - m_ref[...]) / l_ref[...]


def pack_params(params):
    """Pack (w1,b1,w2,b2,w3,b3) into one f32 slab of [W.T | b] row blocks."""
    S = params["w1"].shape[0]
    A = params["w3"].shape[1]
    C = max(S, 16, 8) + 1

    def aug(w, b):
        K, O = w.shape
        blk = jnp.zeros((O, C), jnp.float32)
        blk = blk.at[:, :K].set(w.T.astype(jnp.float32))
        blk = blk.at[:, K:K + 1].set(b.T.astype(jnp.float32))
        return blk

    return jnp.concatenate(
        [aug(params["w1"], params["b1"]),
         aug(params["w2"], params["b2"]),
         aug(params["w3"], params["b3"])], axis=0)        # [24 + A, C]


def reinforce_forward_t(state, packed_params, *, block_b=512):
    """state: [B, state_dim] f32 (natural layout, no transpose needed).
    Returns the lane-dense [n_actions, B] slab (== module output transposed)."""
    B, S = state.shape
    A = packed_params.shape[0] - 24
    C = packed_params.shape[1]

    if B <= block_b:
        bb = B                                # single block == full dims
    else:
        bb = max((block_b // 128) * 128, 128) # lane-dense out block needs %128
    nb = pl.cdiv(B, bb)
    needs_mask = (B % bb) != 0

    kernel = functools.partial(
        _mlp_softmax_kernel, state_dim=S, n_actions=A,
        block_b=bb, batch=B, needs_mask=needs_mask)

    # Two passes: MLP recomputed in each (FMAs = 2 flops), plus softmax work.
    flops = 4 * B * (S * 16 + 16 * 8 + 8 * A) + 8 * B * A
    bytes_accessed = 2 * B * S * 4 + (24 + A) * C * 4 + 2 * A * B * 4
    cost = pl.CostEstimate(flops=flops, transcendentals=2 * B * A,
                           bytes_accessed=bytes_accessed)

    return pl.pallas_call(
        kernel,
        out_shape=jax.ShapeDtypeStruct((A, B), jnp.float32),
        grid=(2, nb),
        in_specs=[
            pl.BlockSpec((bb, S), lambda p, i: (i, 0)),        # x: blocked over B
            pl.BlockSpec((24 + A, C), lambda p, i: (0, 0)),    # params: resident
        ],
        out_specs=pl.BlockSpec((A, bb), lambda p, i: (0, i)),  # lane-dense [A, Bblk]
        scratch_shapes=[pltpu.VMEM((A, 1), jnp.float32),       # running max
                        pltpu.VMEM((A, 1), jnp.float32)],      # running sum(exp)
        compiler_params=pltpu.CompilerParams(
            # TODO(synk): on v7x, run the stats pass "parallel" across the two
            # TensorCores with a cross-core combine; kept sequential here since
            # the running softmax stats live in per-core scratch.
            dimension_semantics=("arbitrary", "arbitrary")),
        cost_estimate=cost,
    )(state, packed_params)


def reinforce_forward(state, packed_params, *, block_b=512):
    """Module-compatible [B, n_actions] output.  Prefer reinforce_forward_t
    (lane-dense [A, B], no relayout) when downstream can take that layout."""
    return reinforce_forward_t(state, packed_params, block_b=block_b).T


def init_params(key, state_dim, n_actions):
    """PyTorch-style default init: U(-1/sqrt(fan_in), 1/sqrt(fan_in))."""
    ks = jax.random.split(key, 6)

    def lin(kw, kb, fan_in, fan_out):
        bound = 1.0 / jnp.sqrt(jnp.float32(fan_in))
        w = jax.random.uniform(kw, (fan_in, fan_out), jnp.float32, -bound, bound)
        b = jax.random.uniform(kb, (1, fan_out), jnp.float32, -bound, bound)
        return w, b

    w1, b1 = lin(ks[0], ks[1], state_dim, 16)
    w2, b2 = lin(ks[2], ks[3], 16, 8)
    w3, b3 = lin(ks[4], ks[5], 8, n_actions)
    return {"w1": w1, "b1": b1, "w2": w2, "b2": b2, "w3": w3, "b3": b3}


def reference_forward(state, p):
    hp = jax.lax.Precision.HIGHEST   # true-f32 reference matmuls
    h1 = jnp.maximum(jnp.dot(state, p["w1"], precision=hp) + p["b1"], 0.0)
    h2 = jnp.maximum(jnp.dot(h1, p["w2"], precision=hp) + p["b2"], 0.0)
    logits = jnp.dot(h2, p["w3"], precision=hp) + p["b3"]
    return jax.nn.softmax(logits, axis=0)    # Softmax(dim=0): over the batch


if __name__ == "__main__":
    state_dim = 4
    n_actions = 2

    key = jax.random.PRNGKey(0)
    k_state, k_params, k_state2 = jax.random.split(key, 3)
    params = init_params(k_params, state_dim, n_actions)
    packed = pack_params(params)          # pack once, reuse every call

    # --- Toy batch: single block, module-compatible [B, A] output ----------
    batch = 8
    state = jax.random.normal(k_state, (batch, state_dim), jnp.float32)
    out = jax.block_until_ready(reinforce_forward(state, packed))
    ref = reference_forward(state, params)
    assert out.shape == (batch, n_actions)
    assert jnp.allclose(out, ref, atol=1e-5, rtol=1e-5), \
        float(jnp.max(jnp.abs(out - ref)))
    # dim-0 softmax: each action column sums to 1 (exact division now).
    assert jnp.allclose(jnp.sum(out, axis=0), jnp.ones((n_actions,)), atol=1e-5)

    # --- Gridded + masked-tail batch: exercises cross-block dim-0 softmax --
    batch2 = 300
    state2 = jax.random.normal(k_state2, (batch2, state_dim), jnp.float32)
    out2_t = jax.block_until_ready(
        reinforce_forward_t(state2, packed, block_b=128))   # [A, B] lane-dense
    ref2_t = reference_forward(state2, params).T
    assert out2_t.shape == (n_actions, batch2)
    assert jnp.allclose(out2_t, ref2_t, atol=1e-5, rtol=1e-5), \
        float(jnp.max(jnp.abs(out2_t - ref2_t)))

    print("KERNEL_OK")
</pallas_src>

<mosaic_0001>
module attributes {stable_mosaic.version = 11 : i64} {
  func.func @_mlp_softmax_kernel(%arg0: i32, %arg1: i32, %arg2: memref<8x4xf32, #tpu.memory_space<vmem>>, %arg3: memref<26x17xf32, #tpu.memory_space<vmem>>, %arg4: memref<2x8xf32, #tpu.memory_space<vmem>>, %arg5: memref<2x1xf32, #tpu.memory_space<vmem>>, %arg6: memref<2x1xf32, #tpu.memory_space<vmem>>) attributes {dimension_semantics = [#tpu.dimension_semantics<arbitrary>, #tpu.dimension_semantics<arbitrary>], iteration_bounds = array<i64: 2, 1>, scalar_prefetch = 0 : i64, scratch_operands = 2 : i64, tpu.core_type = #tpu.core_type<tc>, window_params = [{transform_indices = @transform_0, window_bounds = array<i64: 8, 4>}, {pipeline_mode = #tpu.pipeline_mode<synchronous>, transform_indices = @transform_1, window_bounds = array<i64: 26, 17>}, {transform_indices = @transform_2, window_bounds = array<i64: 2, 8>}]} {
    %c0 = arith.constant 0 : index
    %c0_0 = arith.constant 0 : index
    %0 = vector.load %arg2[%c0, %c0_0] : memref<8x4xf32, #tpu.memory_space<vmem>>, vector<8x4xf32>
    %1 = tpu.transpose %0, [1, 0] : vector<8x4xf32> -> vector<4x8xf32>
    %c0_1 = arith.constant 0 : index
    %c0_2 = arith.constant 0 : index
    %2 = vector.load %arg3[%c0_1, %c0_2] : memref<26x17xf32, #tpu.memory_space<vmem>>, vector<26x17xf32>
    %3 = vector.extract_strided_slice %2 {offsets = [0, 0], sizes = [16, 17], strides = [1, 1]} : vector<26x17xf32> to vector<16x17xf32>
    %4 = vector.extract_strided_slice %3 {offsets = [0, 4], sizes = [16, 1], strides = [1, 1]} : vector<16x17xf32> to vector<16x1xf32>
    %5 = vector.extract_strided_slice %3 {offsets = [0, 0], sizes = [16, 1], strides = [1, 1]} : vector<16x17xf32> to vector<16x1xf32>
    %6 = vector.extract_strided_slice %1 {offsets = [0, 0], sizes = [1, 8], strides = [1, 1]} : vector<4x8xf32> to vector<1x8xf32>
    %7 = vector.broadcast %5 : vector<16x1xf32> to vector<16x8xf32>
    %8 = vector.broadcast %6 : vector<1x8xf32> to vector<16x8xf32>
    %9 = arith.mulf %7, %8 : vector<16x8xf32>
    %10 = vector.broadcast %4 : vector<16x1xf32> to vector<16x8xf32>
    %11 = arith.addf %10, %9 : vector<16x8xf32>
    %12 = vector.extract_strided_slice %3 {offsets = [0, 1], sizes = [16, 1], strides = [1, 1]} : vector<16x17xf32> to vector<16x1xf32>
    %13 = vector.extract_strided_slice %1 {offsets = [1, 0], sizes = [1, 8], strides = [1, 1]} : vector<4x8xf32> to vector<1x8xf32>
    %14 = vector.broadcast %12 : vector<16x1xf32> to vector<16x8xf32>
    %15 = vector.broadcast %13 : vector<1x8xf32> to vector<16x8xf32>
    %16 = arith.mulf %14, %15 : vector<16x8xf32>
    %17 = arith.addf %11, %16 : vector<16x8xf32>
    %18 = vector.extract_strided_slice %3 {offsets = [0, 2], sizes = [16, 1], strides = [1, 1]} : vector<16x17xf32> to vector<16x1xf32>
    %19 = vector.extract_strided_slice %1 {offsets = [2, 0], sizes = [1, 8], strides = [1, 1]} : vector<4x8xf32> to vector<1x8xf32>
    %20 = vector.broadcast %18 : vector<16x1xf32> to vector<16x8xf32>
    %21 = vector.broadcast %19 : vector<1x8xf32> to vector<16x8xf32>
    %22 = arith.mulf %20, %21 : vector<16x8xf32>
    %23 = arith.addf %17, %22 : vector<16x8xf32>
    %24 = vector.extract_strided_slice %3 {offsets = [0, 3], sizes = [16, 1], strides = [1, 1]} : vector<16x17xf32> to vector<16x1xf32>
    %25 = vector.extract_strided_slice %1 {offsets = [3, 0], sizes = [1, 8], strides = [1, 1]} : vector<4x8xf32> to vector<1x8xf32>
    %26 = vector.broadcast %24 : vector<16x1xf32> to vector<16x8xf32>
    %27 = vector.broadcast %25 : vector<1x8xf32> to vector<16x8xf32>
    %28 = arith.mulf %26, %27 : vector<16x8xf32>
    %29 = arith.addf %23, %28 : vector<16x8xf32>
    %cst = arith.constant 0.000000e+00 : f32
    %30 = vector.broadcast %cst : f32 to vector<16x8xf32>
    %31 = arith.maximumf %29, %30 : vector<16x8xf32>
    %32 = vector.extract_strided_slice %2 {offsets = [16, 0], sizes = [8, 17], strides = [1, 1]} : vector<26x17xf32> to vector<8x17xf32>
    %33 = vector.extract_strided_slice %32 {offsets = [0, 16], sizes = [8, 1], strides = [1, 1]} : vector<8x17xf32> to vector<8x1xf32>
    %34 = vector.extract_strided_slice %32 {offsets = [0, 0], sizes = [8, 1], strides = [1, 1]} : vector<8x17xf32> to vector<8x1xf32>
    %35 = vector.extract_strided_slice %31 {offsets = [0, 0], sizes = [1, 8], strides = [1, 1]} : vector<16x8xf32> to vector<1x8xf32>
    %36 = vector.broadcast %34 : vector<8x1xf32> to vector<8x8xf32>
    %37 = vector.broadcast %35 : vector<1x8xf32> to vector<8x8xf32>
    %38 = arith.mulf %36, %37 : vector<8x8xf32>
    %39 = vector.broadcast %33 : vector<8x1xf32> to vector<8x8xf32>
    %40 = arith.addf %39, %38 : vector<8x8xf32>
    %41 = vector.extract_strided_slice %32 {offsets = [0, 1], sizes = [8, 1], strides = [1, 1]} : vector<8x17xf32> to vector<8x1xf32>
    %42 = vector.extract_strided_slice %31 {offsets = [1, 0], sizes = [1, 8], strides = [1, 1]} : vector<16x8xf32> to vector<1x8xf32>
    %43 = vector.broadcast %41 : vector<8x1xf32> to vector<8x8xf32>
    %44 = vector.broadcast %42 : vector<1x8xf32> to vector<8x8xf32>
    %45 = arith.mulf %43, %44 : vector<8x8xf32>
    %46 = arith.addf %40, %45 : vector<8x8xf32>
    %47 = vector.extract_strided_slice %32 {offsets = [0, 2], sizes = [8, 1], strides = [1, 1]} : vector<8x17xf32> to vector<8x1xf32>
    %48 = vector.extract_strided_slice %31 {offsets = [2, 0], sizes = [1, 8], strides = [1, 1]} : vector<16x8xf32> to vector<1x8xf32>
    %49 = vector.broadcast %47 : vector<8x1xf32> to vector<8x8xf32>
    %50 = vector.broadcast %48 : vector<1x8xf32> to vector<8x8xf32>
    %51 = arith.mulf %49, %50 : vector<8x8xf32>
    %52 = arith.addf %46, %51 : vector<8x8xf32>
    %53 = vector.extract_strided_slice %32 {offsets = [0, 3], sizes = [8, 1], strides = [1, 1]} : vector<8x17xf32> to vector<8x1xf32>
    %54 = vector.extract_strided_slice %31 {offsets = [3, 0], sizes = [1, 8], strides = [1, 1]} : vector<16x8xf32> to vector<1x8xf32>
    %55 = vector.broadcast %53 : vector<8x1xf32> to vector<8x8xf32>
    %56 = vector.broadcast %54 : vector<1x8xf32> to vector<8x8xf32>
    %57 = arith.mulf %55, %56 : vector<8x8xf32>
    %58 = arith.addf %52, %57 : vector<8x8xf32>
    %59 = vector.extract_strided_slice %32 {offsets = [0, 4], sizes = [8, 1], strides = [1, 1]} : vector<8x17xf32> to vector<8x1xf32>
    %60 = vector.extract_strided_slice %31 {offsets = [4, 0], sizes = [1, 8], strides = [1, 1]} : vector<16x8xf32> to vector<1x8xf32>
    %61 = vector.broadcast %59 : vector<8x1xf32> to vector<8x8xf32>
    %62 = vector.broadcast %60 : vector<1x8xf32> to vector<8x8xf32>
    %63 = arith.mulf %61, %62 : vector<8x8xf32>
    %64 = arith.addf %58, %63 : vector<8x8xf32>
    %65 = vector.extract_strided_slice %32 {offsets = [0, 5], sizes = [8, 1], strides = [1, 1]} : vector<8x17xf32> to vector<8x1xf32>
    %66 = vector.extract_strided_slice %31 {offsets = [5, 0], sizes = [1, 8], strides = [1, 1]} : vector<16x8xf32> to vector<1x8xf32>
    %67 = vector.broadcast %65 : vector<8x1xf32> to vector<8x8xf32>
    %68 = vector.broadcast %66 : vector<1x8xf32> to vector<8x8xf32>
    %69 = arith.mulf %67, %68 : vector<8x8xf32>
    %70 = arith.addf %64, %69 : vector<8x8xf32>
    %71 = vector.extract_strided_slice %32 {offsets = [0, 6], sizes = [8, 1], strides = [1, 1]} : vector<8x17xf32> to vector<8x1xf32>
    %72 = vector.extract_strided_slice %31 {offsets = [6, 0], sizes = [1, 8], strides = [1, 1]} : vector<16x8xf32> to vector<1x8xf32>
    %73 = vector.broadcast %71 : vector<8x1xf32> to vector<8x8xf32>
    %74 = vector.broadcast %72 : vector<1x8xf32> to vector<8x8xf32>
    %75 = arith.mulf %73, %74 : vector<8x8xf32>
    %76 = arith.addf %70, %75 : vector<8x8xf32>
    %77 = vector.extract_strided_slice %32 {offsets = [0, 7], sizes = [8, 1], strides = [1, 1]} : vector<8x17xf32> to vector<8x1xf32>
    %78 = vector.extract_strided_slice %31 {offsets = [7, 0], sizes = [1, 8], strides = [1, 1]} : vector<16x8xf32> to vector<1x8xf32>
    %79 = vector.broadcast %77 : vector<8x1xf32> to vector<8x8xf32>
    %80 = vector.broadcast %78 : vector<1x8xf32> to vector<8x8xf32>
    %81 = arith.mulf %79, %80 : vector<8x8xf32>
    %82 = arith.addf %76, %81 : vector<8x8xf32>
    %83 = vector.extract_strided_slice %32 {offsets = [0, 8], sizes = [8, 1], strides = [1, 1]} : vector<8x17xf32> to vector<8x1xf32>
    %84 = vector.extract_strided_slice %31 {offsets = [8, 0], sizes = [1, 8], strides = [1, 1]} : vector<16x8xf32> to vector<1x8xf32>
    %85 = vector.broadcast %83 : vector<8x1xf32> to vector<8x8xf32>
    %86 = vector.broadcast %84 : vector<1x8xf32> to vector<8x8xf32>
    %87 = arith.mulf %85, %86 : vector<8x8xf32>
    %88 = arith.addf %82, %87 : vector<8x8xf32>
    %89 = vector.extract_strided_slice %32 {offsets = [0, 9], sizes = [8, 1], strides = [1, 1]} : vector<8x17xf32> to vector<8x1xf32>
    %90 = vector.extract_strided_slice %31 {offsets = [9, 0], sizes = [1, 8], strides = [1, 1]} : vector<16x8xf32> to vector<1x8xf32>
    %91 = vector.broadcast %89 : vector<8x1xf32> to vector<8x8xf32>
    %92 = vector.broadcast %90 : vector<1x8xf32> to vector<8x8xf32>
    %93 = arith.mulf %91, %92 : vector<8x8xf32>
    %94 = arith.addf %88, %93 : vector<8x8xf32>
    %95 = vector.extract_strided_slice %32 {offsets = [0, 10], sizes = [8, 1], strides = [1, 1]} : vector<8x17xf32> to vector<8x1xf32>
    %96 = vector.extract_strided_slice %31 {offsets = [10, 0], sizes = [1, 8], strides = [1, 1]} : vector<16x8xf32> to vector<1x8xf32>
    %97 = vector.broadcast %95 : vector<8x1xf32> to vector<8x8xf32>
    %98 = vector.broadcast %96 : vector<1x8xf32> to vector<8x8xf32>
    %99 = arith.mulf %97, %98 : vector<8x8xf32>
    %100 = arith.addf %94, %99 : vector<8x8xf32>
    %101 = vector.extract_strided_slice %32 {offsets = [0, 11], sizes = [8, 1], strides = [1, 1]} : vector<8x17xf32> to vector<8x1xf32>
    %102 = vector.extract_strided_slice %31 {offsets = [11, 0], sizes = [1, 8], strides = [1, 1]} : vector<16x8xf32> to vector<1x8xf32>
    %103 = vector.broadcast %101 : vector<8x1xf32> to vector<8x8xf32>
    %104 = vector.broadcast %102 : vector<1x8xf32> to vector<8x8xf32>
    %105 = arith.mulf %103, %104 : vector<8x8xf32>
    %106 = arith.addf %100, %105 : vector<8x8xf32>
    %107 = vector.extract_strided_slice %32 {offsets = [0, 12], sizes = [8, 1], strides = [1, 1]} : vector<8x17xf32> to vector<8x1xf32>
    %108 = vector.extract_strided_slice %31 {offsets = [12, 0], sizes = [1, 8], strides = [1, 1]} : vector<16x8xf32> to vector<1x8xf32>
    %109 = vector.broadcast %107 : vector<8x1xf32> to vector<8x8xf32>
    %110 = vector.broadcast %108 : vector<1x8xf32> to vector<8x8xf32>
    %111 = arith.mulf %109, %110 : vector<8x8xf32>
    %112 = arith.addf %106, %111 : vector<8x8xf32>
    %113 = vector.extract_strided_slice %32 {offsets = [0, 13], sizes = [8, 1], strides = [1, 1]} : vector<8x17xf32> to vector<8x1xf32>
    %114 = vector.extract_strided_slice %31 {offsets = [13, 0], sizes = [1, 8], strides = [1, 1]} : vector<16x8xf32> to vector<1x8xf32>
    %115 = vector.broadcast %113 : vector<8x1xf32> to vector<8x8xf32>
    %116 = vector.broadcast %114 : vector<1x8xf32> to vector<8x8xf32>
    %117 = arith.mulf %115, %116 : vector<8x8xf32>
    %118 = arith.addf %112, %117 : vector<8x8xf32>
    %119 = vector.extract_strided_slice %32 {offsets = [0, 14], sizes = [8, 1], strides = [1, 1]} : vector<8x17xf32> to vector<8x1xf32>
    %120 = vector.extract_strided_slice %31 {offsets = [14, 0], sizes = [1, 8], strides = [1, 1]} : vector<16x8xf32> to vector<1x8xf32>
    %121 = vector.broadcast %119 : vector<8x1xf32> to vector<8x8xf32>
    %122 = vector.broadcast %120 : vector<1x8xf32> to vector<8x8xf32>
    %123 = arith.mulf %121, %122 : vector<8x8xf32>
    %124 = arith.addf %118, %123 : vector<8x8xf32>
    %125 = vector.extract_strided_slice %32 {offsets = [0, 15], sizes = [8, 1], strides = [1, 1]} : vector<8x17xf32> to vector<8x1xf32>
    %126 = vector.extract_strided_slice %31 {offsets = [15, 0], sizes = [1, 8], strides = [1, 1]} : vector<16x8xf32> to vector<1x8xf32>
    %127 = vector.broadcast %125 : vector<8x1xf32> to vector<8x8xf32>
    %128 = vector.broadcast %126 : vector<1x8xf32> to vector<8x8xf32>
    %129 = arith.mulf %127, %128 : vector<8x8xf32>
    %130 = arith.addf %124, %129 : vector<8x8xf32>
    %cst_3 = arith.constant 0.000000e+00 : f32
    %131 = vector.broadcast %cst_3 : f32 to vector<8x8xf32>
    %132 = arith.maximumf %130, %131 : vector<8x8xf32>
    %133 = vector.extract_strided_slice %2 {offsets = [24, 0], sizes = [2, 17], strides = [1, 1]} : vector<26x17xf32> to vector<2x17xf32>
    %134 = vector.extract_strided_slice %133 {offsets = [0, 8], sizes = [2, 1], strides = [1, 1]} : vector<2x17xf32> to vector<2x1xf32>
    %135 = vector.extract_strided_slice %133 {offsets = [0, 0], sizes = [2, 1], strides = [1, 1]} : vector<2x17xf32> to vector<2x1xf32>
    %136 = vector.extract_strided_slice %132 {offsets = [0, 0], sizes = [1, 8], strides = [1, 1]} : vector<8x8xf32> to vector<1x8xf32>
    %137 = vector.broadcast %135 : vector<2x1xf32> to vector<2x8xf32>
    %138 = vector.broadcast %136 : vector<1x8xf32> to vector<2x8xf32>
    %139 = arith.mulf %137, %138 : vector<2x8xf32>
    %140 = vector.broadcast %134 : vector<2x1xf32> to vector<2x8xf32>
    %141 = arith.addf %140, %139 : vector<2x8xf32>
    %142 = vector.extract_strided_slice %133 {offsets = [0, 1], sizes = [2, 1], strides = [1, 1]} : vector<2x17xf32> to vector<2x1xf32>
    %143 = vector.extract_strided_slice %132 {offsets = [1, 0], sizes = [1, 8], strides = [1, 1]} : vector<8x8xf32> to vector<1x8xf32>
    %144 = vector.broadcast %142 : vector<2x1xf32> to vector<2x8xf32>
    %145 = vector.broadcast %143 : vector<1x8xf32> to vector<2x8xf32>
    %146 = arith.mulf %144, %145 : vector<2x8xf32>
    %147 = arith.addf %141, %146 : vector<2x8xf32>
    %148 = vector.extract_strided_slice %133 {offsets = [0, 2], sizes = [2, 1], strides = [1, 1]} : vector<2x17xf32> to vector<2x1xf32>
    %149 = vector.extract_strided_slice %132 {offsets = [2, 0], sizes = [1, 8], strides = [1, 1]} : vector<8x8xf32> to vector<1x8xf32>
    %150 = vector.broadcast %148 : vector<2x1xf32> to vector<2x8xf32>
    %151 = vector.broadcast %149 : vector<1x8xf32> to vector<2x8xf32>
    %152 = arith.mulf %150, %151 : vector<2x8xf32>
    %153 = arith.addf %147, %152 : vector<2x8xf32>
    %154 = vector.extract_strided_slice %133 {offsets = [0, 3], sizes = [2, 1], strides = [1, 1]} : vector<2x17xf32> to vector<2x1xf32>
    %155 = vector.extract_strided_slice %132 {offsets = [3, 0], sizes = [1, 8], strides = [1, 1]} : vector<8x8xf32> to vector<1x8xf32>
    %156 = vector.broadcast %154 : vector<2x1xf32> to vector<2x8xf32>
    %157 = vector.broadcast %155 : vector<1x8xf32> to vector<2x8xf32>
    %158 = arith.mulf %156, %157 : vector<2x8xf32>
    %159 = arith.addf %153, %158 : vector<2x8xf32>
    %160 = vector.extract_strided_slice %133 {offsets = [0, 4], sizes = [2, 1], strides = [1, 1]} : vector<2x17xf32> to vector<2x1xf32>
    %161 = vector.extract_strided_slice %132 {offsets = [4, 0], sizes = [1, 8], strides = [1, 1]} : vector<8x8xf32> to vector<1x8xf32>
    %162 = vector.broadcast %160 : vector<2x1xf32> to vector<2x8xf32>
    %163 = vector.broadcast %161 : vector<1x8xf32> to vector<2x8xf32>
    %164 = arith.mulf %162, %163 : vector<2x8xf32>
    %165 = arith.addf %159, %164 : vector<2x8xf32>
    %166 = vector.extract_strided_slice %133 {offsets = [0, 5], sizes = [2, 1], strides = [1, 1]} : vector<2x17xf32> to vector<2x1xf32>
    %167 = vector.extract_strided_slice %132 {offsets = [5, 0], sizes = [1, 8], strides = [1, 1]} : vector<8x8xf32> to vector<1x8xf32>
    %168 = vector.broadcast %166 : vector<2x1xf32> to vector<2x8xf32>
    %169 = vector.broadcast %167 : vector<1x8xf32> to vector<2x8xf32>
    %170 = arith.mulf %168, %169 : vector<2x8xf32>
    %171 = arith.addf %165, %170 : vector<2x8xf32>
    %172 = vector.extract_strided_slice %133 {offsets = [0, 6], sizes = [2, 1], strides = [1, 1]} : vector<2x17xf32> to vector<2x1xf32>
    %173 = vector.extract_strided_slice %132 {offsets = [6, 0], sizes = [1, 8], strides = [1, 1]} : vector<8x8xf32> to vector<1x8xf32>
    %174 = vector.broadcast %172 : vector<2x1xf32> to vector<2x8xf32>
    %175 = vector.broadcast %173 : vector<1x8xf32> to vector<2x8xf32>
    %176 = arith.mulf %174, %175 : vector<2x8xf32>
    %177 = arith.addf %171, %176 : vector<2x8xf32>
    %178 = vector.extract_strided_slice %133 {offsets = [0, 7], sizes = [2, 1], strides = [1, 1]} : vector<2x17xf32> to vector<2x1xf32>
    %179 = vector.extract_strided_slice %132 {offsets = [7, 0], sizes = [1, 8], strides = [1, 1]} : vector<8x8xf32> to vector<1x8xf32>
    %180 = vector.broadcast %178 : vector<2x1xf32> to vector<2x8xf32>
    %181 = vector.broadcast %179 : vector<1x8xf32> to vector<2x8xf32>
    %182 = arith.mulf %180, %181 : vector<2x8xf32>
    %183 = arith.addf %177, %182 : vector<2x8xf32>
    %c0_i32 = arith.constant 0 : i32
    %184 = arith.cmpi eq, %arg0, %c0_i32 : i32
    %c0_i32_4 = arith.constant 0 : i32
    %185 = arith.cmpi eq, %arg1, %c0_i32_4 : i32
    %186 = arith.andi %184, %185 : i1
    %187 = arith.extui %186 : i1 to i32
    %c0_i32_5 = arith.constant 0 : i32
    %188 = arith.cmpi ne, %187, %c0_i32_5 : i32
    scf.if %188 {
      %cst_9 = arith.constant 0xFF800000 : f32
      %195 = vector.broadcast %cst_9 : f32 to vector<2x1xf32>
      %c0_10 = arith.constant 0 : index
      %c0_11 = arith.constant 0 : index
      %196 = vector.load %arg5[%c0_10, %c0_11] : memref<2x1xf32, #tpu.memory_space<vmem>>, vector<2x1xf32>
      tpu.vector_store %arg5[%c0_10, %c0_11], %195 {strides = array<i32>} : memref<2x1xf32, #tpu.memory_space<vmem>>, vector<2x1xf32>,
      %cst_12 = arith.constant 0.000000e+00 : f32
      %197 = vector.broadcast %cst_12 : f32 to vector<2x1xf32>
      %c0_13 = arith.constant 0 : index
      %c0_14 = arith.constant 0 : index
      %198 = vector.load %arg6[%c0_13, %c0_14] : memref<2x1xf32, #tpu.memory_space<vmem>>, vector<2x1xf32>
      tpu.vector_store %arg6[%c0_13, %c0_14], %197 {strides = array<i32>} : memref<2x1xf32, #tpu.memory_space<vmem>>, vector<2x1xf32>,
    } else {
    }
    %c0_i32_6 = arith.constant 0 : i32
    %189 = arith.cmpi eq, %arg0, %c0_i32_6 : i32
    %190 = arith.extui %189 : i1 to i32
    %c0_i32_7 = arith.constant 0 : i32
    %191 = arith.cmpi ne, %190, %c0_i32_7 : i32
    scf.if %191 {
      %c0_9 = arith.constant 0 : index
      %c0_10 = arith.constant 0 : index
      %195 = vector.load %arg5[%c0_9, %c0_10] : memref<2x1xf32, #tpu.memory_space<vmem>>, vector<2x1xf32>
      %cst_11 = arith.constant dense<0xFF800000> : vector<2xf32>
      %196 = vector.multi_reduction <maximumf>, %183, %cst_11 [1] : vector<2x8xf32> to vector<2xf32>
      %197 = vector.shape_cast %196 : vector<2xf32> to vector<2x1xf32>
      %198 = arith.maximumf %195, %197 : vector<2x1xf32>
      %c0_12 = arith.constant 0 : index
      %c0_13 = arith.constant 0 : index
      %199 = vector.load %arg6[%c0_12, %c0_13] : memref<2x1xf32, #tpu.memory_space<vmem>>, vector<2x1xf32>
      %200 = arith.subf %195, %198 : vector<2x1xf32>
      %201 = math.exp %200 : vector<2x1xf32>
      %202 = arith.mulf %199, %201 : vector<2x1xf32>
      %203 = vector.broadcast %198 : vector<2x1xf32> to vector<2x8xf32>
      %204 = arith.subf %183, %203 : vector<2x8xf32>
      %205 = math.exp %204 : vector<2x8xf32>
      %cst_14 = arith.constant dense<0.000000e+00> : vector<2xf32>
      %206 = vector.multi_reduction <add>, %205, %cst_14 [1] : vector<2x8xf32> to vector<2xf32>
      %207 = vector.shape_cast %206 : vector<2xf32> to vector<2x1xf32>
      %208 = arith.addf %202, %207 : vector<2x1xf32>
      %c0_15 = arith.constant 0 : index
      %c0_16 = arith.constant 0 : index
      %209 = vector.load %arg6[%c0_15, %c0_16] : memref<2x1xf32, #tpu.memory_space<vmem>>, vector<2x1xf32>
      tpu.vector_store %arg6[%c0_15, %c0_16], %208 {strides = array<i32>} : memref<2x1xf32, #tpu.memory_space<vmem>>, vector<2x1xf32>,
      %c0_17 = arith.constant 0 : index
      %c0_18 = arith.constant 0 : index
      %210 = vector.load %arg5[%c0_17, %c0_18] : memref<2x1xf32, #tpu.memory_space<vmem>>, vector<2x1xf32>
      tpu.vector_store %arg5[%c0_17, %c0_18], %198 {strides = array<i32>} : memref<2x1xf32, #tpu.memory_space<vmem>>, vector<2x1xf32>,
    } else {
    }
    %c1_i32 = arith.constant 1 : i32
    %192 = arith.cmpi eq, %arg0, %c1_i32 : i32
    %193 = arith.extui %192 : i1 to i32
    %c0_i32_8 = arith.constant 0 : i32
    %194 = arith.cmpi ne, %193, %c0_i32_8 : i32
    scf.if %194 {
      %c0_9 = arith.constant 0 : index
      %c0_10 = arith.constant 0 : index
      %195 = vector.load %arg5[%c0_9, %c0_10] : memref<2x1xf32, #tpu.memory_space<vmem>>, vector<2x1xf32>
      %196 = vector.broadcast %195 : vector<2x1xf32> to vector<2x8xf32>
      %197 = arith.subf %183, %196 : vector<2x8xf32>
      %198 = math.exp %197 : vector<2x8xf32>
      %c0_11 = arith.constant 0 : index
      %c0_12 = arith.constant 0 : index
      %199 = vector.load %arg6[%c0_11, %c0_12] : memref<2x1xf32, #tpu.memory_space<vmem>>, vector<2x1xf32>
      %200 = vector.broadcast %199 : vector<2x1xf32> to vector<2x8xf32>
      %201 = arith.divf %198, %200 : vector<2x8xf32>
      %c0_13 = arith.constant 0 : index
      %c0_14 = arith.constant 0 : index
      %202 = vector.load %arg4[%c0_13, %c0_14] : memref<2x8xf32, #tpu.memory_space<vmem>>, vector<2x8xf32>
      tpu.vector_store %arg4[%c0_13, %c0_14], %201 {strides = array<i32>} : memref<2x8xf32, #tpu.memory_space<vmem>>, vector<2x8xf32>,
    } else {
    }
    return
  }
  func.func @transform_0(%arg0: i32, %arg1: i32) -> (i32, i32) {
    %c0_i32 = arith.constant 0 : i32
    %c0_i32_0 = arith.constant 0 : i32
    return %arg1, %c0_i32 : i32, i32
  }
  func.func @transform_1(%arg0: i32, %arg1: i32) -> (i32, i32) {
    %c0_i32 = arith.constant 0 : i32
    %c0_i32_0 = arith.constant 0 : i32
    %c0_i32_1 = arith.constant 0 : i32
    return %c0_i32, %c0_i32_0 : i32, i32
  }
  func.func @transform_2(%arg0: i32, %arg1: i32) -> (i32, i32) {
    %c0_i32 = arith.constant 0 : i32
    %c0_i32_0 = arith.constant 0 : i32
    return %c0_i32, %arg1 : i32, i32
  }
}

</mosaic_0001>

<bundles_post_ra>
// kernel: tpu_custom_call.1
= control target key start
LH: loop header
LB: loop body
LE: loop exit
PB: predicated region body
PF: predicated region fallthrough
CT: control target
= control target key end

     0   :  { %7 = vsyncpa [#allocation5], 0  ;;  %s767_s9 = smov 0   ;;  %s769_s10 = smov 0   ;;  %s849_s0 = inlined_call_operand.vmem [shape: f32[8,4], index: 0, kind: input, shape index: {}]   ;;  %s850_s1 = inlined_call_operand.vmem [shape: f32[26,17], index: 1, kind: input, shape index: {}]   ;;  %s851_s2 = inlined_call_operand.hbm [shape: f32[2,8], index: 2, kind: output, shape index: {}]  }
   0x1   :  { %s771_s11 = smov 0  }
   0x2 LB: > { %s562_s12 = sadd.s32 4294967295, %s728_s11   ;;  %s25_s13 = sadd.s32 1, %s724_s10  ;;  %s728_s11 = sphi %s771_s11, %s13_s11   ;;  %s724_s10 = sphi %s769_s10, %s853_s10   ;;  %s720_s9 = sphi %s767_s9, %s852_s9  }
   0x3   : > { %p27_p0 = scmp.ge.s32.totalorder %s25_s13, 2  ;;  %p565_p1 = scmp.ge.s32.totalorder %s728_s11, 1 }
   0x4   : > { %p124_p2 = scmp.lt.s32.totalorder %s728_s11, 3 }
   0x5   : > { %s855_s13 = smov (%p27_p0, %s25_s13), 0 }
   0x6   : > { %p125_p3 = pnand %p565_p1, %p124_p2 }
   0x7   : > { %p424_p4 = scmp.eq.s32.totalorder (!%p125_p3), %s720_s9, 0 }
   0x8   : > { %128 = sbr.rel (%p125_p3) target bundleno = 834 (0x342), region = 28 }
   0xd   : > { %v144_v0 = vld [vmem:[%s849_s0] sm:$0xff]  ;;  %v178_v1 = vld [vmem:[%s850_s1 + $0x8] sm:$0xff]  ;;  %v730_v2 = vmov 4   ;;  %v731_v3 = vmov 0   ;;  %v732_v5 = vmov 1   ;;  %v733_v6 = vmov 2  }
   0xe   : > { %630 = vset.pattern.permute.xlu2 %v730_v2  ;;  %628 = vset.pattern.permute.xlu1 %v731_v3  ;;  %v799_v4 = vld [vmem:[%s850_s1] sm:$0xff]  ;;  %v734_v7 = vmov 3   ;;  %v179_v8 = vld [vmem:[%s850_s1 + $0x10] sm:$0xff]  ;;  %v735_v9 = vmov 16   ;;  %v736_v10 = vmov 5   ;;  %v737_v11 = vmov 7  }
   0xf   : > { %145 = vxpose.xlu0.b32.start.end [1/1] (short) (narrow) %v144_v0, 8  ;;  %199 = vperm.xlu2 %630, %v178_v1   ;;  %v738_v12 = vmov 6   ;;  %v739_v13 = vmov 9   ;;  %v740_v14 = vmov 8   ;;  %v741_v15 = vmov 11  }
  0x10   : > { %188 = vperm.xlu1 %628, %v178_v1   ;;  %v742_v16 = vmov 10   ;;  %v743_v17 = vmov 13   ;;  %v744_v18 = vmov 12   ;;  %v745_v19 = vmov 15   ;;  %v180_v21 = vld [vmem:[%s850_s1 + $0x18] sm:$0x3] }
  0x11   : > { %v746_v20 = vmov 14   ;;  %vm430_vm0 = vcmask (%p424_p4), 1024  }
  0x17   : > { %631 = vset.pattern.permute.xlu2 %v732_v5 }
  0x18   : > { %629 = vset.pattern.permute.xlu1 %v730_v2  ;;  %205 = vperm.xlu2 %631, %v799_v4  }
  0x19   : > { %195 = vperm.xlu1 %629, %v799_v4  }
  0x20   : > { %633 = vset.pattern.permute.xlu2 %v733_v6 }
  0x21   : > { %632 = vset.pattern.permute.xlu1 %v732_v5  ;;  %218 = vperm.xlu2 %633, %v799_v4  }
  0x22   : > { %209 = vperm.xlu1 %632, %v178_v1  }
  0x29   : > { %635 = vset.pattern.permute.xlu2 %v734_v7 }
  0x2a   : > { %634 = vset.pattern.permute.xlu1 %v733_v6  ;;  %231 = vperm.xlu2 %635, %v799_v4  }
  0x2b   : > { %222 = vperm.xlu1 %634, %v178_v1  }
  0x32   : > { %637 = vset.pattern.permute.xlu2 %v731_v3 }
  0x33   : > { %636 = vset.pattern.permute.xlu1 %v734_v7  ;;  %247 = vperm.xlu2 %637, %v179_v8  }
  0x34   : > { %235 = vperm.xlu1 %636, %v178_v1  }
  0x3b   : > { %639 = vset.pattern.permute.xlu2 %v732_v5 }
  0x3c   : > { %638 = vset.pattern.permute.xlu1 %v735_v9  ;;  %258 = vperm.xlu2 %639, %v179_v8  }
  0x3d   : > { %253 = vperm.xlu1 %638, %v179_v8  }
  0x44   : > { %641 = vset.pattern.permute.xlu2 %v734_v7 }
  0x45   : > { %640 = vset.pattern.permute.xlu1 %v733_v6  ;;  %272 = vperm.xlu2 %641, %v179_v8  }
  0x46   : > { %265 = vperm.xlu1 %640, %v179_v8  }
  0x4d   : > { %643 = vset.pattern.permute.xlu2 %v736_v10 }
  0x4e   : > { %642 = vset.pattern.permute.xlu1 %v730_v2  ;;  %286 = vperm.xlu2 %643, %v179_v8  }
  0x4f   : > { %279 = vperm.xlu1 %642, %v179_v8  }
  0x56   : > { %645 = vset.pattern.permute.xlu2 %v737_v11 }
  0x57   : > { %644 = vset.pattern.permute.xlu1 %v738_v12  ;;  %300 = vperm.xlu2 %645, %v179_v8  }
  0x58   : > { %293 = vperm.xlu1 %644, %v179_v8  }
  0x5f   : > { %647 = vset.pattern.permute.xlu2 %v739_v13 }
  0x60   : > { %646 = vset.pattern.permute.xlu1 %v740_v14  ;;  %314 = vperm.xlu2 %647, %v179_v8  }
  0x61   : > { %307 = vperm.xlu1 %646, %v179_v8  }
  0x68   : > { %649 = vset.pattern.permute.xlu2 %v741_v15 }
  0x69   : > { %648 = vset.pattern.permute.xlu1 %v742_v16  ;;  %328 = vperm.xlu2 %649, %v179_v8   ;;  %v200_v23 = vpop.permute.xlu2 %199 }
  0x6a   : > { %321 = vperm.xlu1 %648, %v179_v8  }
  0x71   : > { %651 = vset.pattern.permute.xlu2 %v743_v17 }
  0x72   : > { %650 = vset.pattern.permute.xlu1 %v744_v18  ;;  %342 = vperm.xlu2 %651, %v179_v8   ;;  %v206_v25 = vpop.permute.xlu2 %205 }
  0x73   : > { %335 = vperm.xlu1 %650, %v179_v8  }
  0x76   : > { %627 = vset.pattern.permute.xlu0 %v731_v3 }
  0x7a   : > { %653 = vset.pattern.permute.xlu2 %v745_v19 }
  0x7b   : > { %652 = vset.pattern.permute.xlu1 %v746_v20  ;;  %356 = vperm.xlu2 %653, %v179_v8   ;;  %v219_v27 = vpop.permute.xlu2 %218 }
  0x7c   : > { %349 = vperm.xlu1 %652, %v179_v8  }
  0x7d   : > { %183 = vperm.xlu0 %627, %v799_v4  }
  0x82   : > { %v189_v22 = vpop.permute.xlu1 %188 }
  0x83   : > { %655 = vset.pattern.permute.xlu2 %v740_v14 }
  0x84   : > { %654 = vset.pattern.permute.xlu1 %v731_v3  ;;  %371 = vperm.xlu2 %655, %v180_v21   ;;  %v232_v29 = vpop.permute.xlu2 %231 }
  0x85   : > { %365 = vperm.xlu1 %654, %v180_v21   ;;  %658 = vset.pattern.permute.xlu0 %v734_v7 }
  0x86   : > { %390 = vperm.xlu0 %658, %v180_v21  }
  0x8b   : > { %v196_v24 = vpop.permute.xlu1 %195 }
  0x8c   : > { %657 = vset.pattern.permute.xlu2 %v733_v6 }
  0x8d   : > { %656 = vset.pattern.permute.xlu1 %v732_v5  ;;  %383 = vperm.xlu2 %657, %v180_v21   ;;  %v248_v35 = vpop.permute.xlu2 %247 }
  0x8e   : > { %376 = vperm.xlu1 %656, %v180_v21   ;;  %663 = vset.pattern.permute.xlu0 %v737_v11 }
  0x94   : > { %v210_v26 = vpop.permute.xlu1 %209 }
  0x95   : > { %660 = vset.pattern.permute.xlu2 %v736_v10 }
  0x96   : > { %659 = vset.pattern.permute.xlu1 %v730_v2  ;;  %404 = vperm.xlu2 %660, %v180_v21   ;;  %v259_v40 = vpop.permute.xlu2 %258 }
  0x97   : > { %397 = vperm.xlu1 %659, %v180_v21  }
  0x9d   : > { %v223_v28 = vpop.permute.xlu1 %222 }
  0x9e   : > { %662 = vset.pattern.permute.xlu2 %v737_v11 }
  0x9f   : > { %661 = vset.pattern.permute.xlu1 %v738_v12  ;;  %418 = vperm.xlu2 %662, %v180_v21   ;;  %v273_v42 = vpop.permute.xlu2 %272 }
  0xa0   : > { %411 = vperm.xlu1 %661, %v180_v21  }
  0xa6   : > { %v236_v33 = vpop.permute.xlu1 %235 }
  0xa8   : > { %v287_v44 = vpop.permute.xlu2 %286 }
  0xaf   : > { %v254_v39 = vpop.permute.xlu1 %253 }
  0xb1   : > { %v301_v46 = vpop.permute.xlu2 %300 }
  0xb3   : > { %v161_v30 = vpop.trf.xlu0 }
  0xb4   : > { %v191_v31 = vperm.slane %v161_v30, 0  ;;  %v212_v32 = vperm.slane %v161_v30, 1  ;;  %v225_v50 = vperm.slane %v161_v30, 2  ;;  %v238_v52 = vperm.slane %v161_v30, 3 }
  0xb6   : > { %v193_v34 = vmul.f32 %v191_v31, %v189_v22  ;;  %v214_v36 = vmul.f32 %v212_v32, %v210_v26  ;;  %v213_v53 = vmul.f32 %v212_v32, %v206_v25  ;;  %v226_v56 = vmul.f32 %v225_v50, %v219_v27 }
  0xb7   : > { %v239_v59 = vmul.f32 %v238_v52, %v232_v29  ;;  %v227_v63 = vmul.f32 %v225_v50, %v223_v28  ;;  %v240_v5 = vmul.f32 %v238_v52, %v236_v33 }
  0xb8   : > { %v203_v37 = vadd.f32 %v200_v23, %v193_v34  ;;  %v266_v41 = vpop.permute.xlu1 %265 }
  0xba   : > { %v216_v38 = vadd.f32 %v214_v36, %v203_v37  ;;  %v315_v48 = vpop.permute.xlu2 %314 }
  0xbc   : > { %v229_v7 = vadd.f32 %v227_v63, %v216_v38 }
  0xbe   : > { %v242_v14 = vadd.f32 %v240_v5, %v229_v7 }
  0xc0   : > { %v244_v22 = vmax.f32 %v242_v14, 0.0 }
  0xc1   : > { %v280_v43 = vpop.permute.xlu1 %279 }
  0xc2   : > { %v317_v29 = vperm.slane %v244_v22, 1  ;;  %v310_v30 = vperm.slane %v244_v22, 0  ;;  %v331_v37 = vperm.slane %v244_v22, 3  ;;  %v324_v38 = vperm.slane %v244_v22, 2 }
  0xc3   : > { %v329_v58 = vpop.permute.xlu2 %328  ;;  %v345_v50 = vperm.slane %v244_v22, 5 }
  0xc4   : > { %v318_v36 = vmul.f32 %v317_v29, %v315_v48 }
  0xca   : > { %v294_v45 = vpop.permute.xlu1 %293 }
  0xcc   : > { %v343_v6 = vpop.permute.xlu2 %342 }
  0xcd   : > { %v346_v52 = vmul.f32 %v345_v50, %v343_v6 }
  0xd3   : > { %v308_v47 = vpop.permute.xlu1 %307 }
  0xd4   : > { %v311_v33 = vmul.f32 %v310_v30, %v308_v47  ;;  %v359_v47 = vperm.slane %v244_v22, 7 }
  0xd5   : > { %v357_v26 = vpop.permute.xlu2 %356 }
  0xdc   : > { %v322_v55 = vpop.permute.xlu1 %321 }
  0xe5   : > { %v336_v2 = vpop.permute.xlu1 %335 }
  0xee   : > { %v350_v21 = vpop.permute.xlu1 %349 }
  0xef   : > { %v184_v49 = vpop.permute.xlu0 %183 }
  0xf0   : > { %v192_v51 = vmul.f32 %v191_v31, %v184_v49 }
  0xf2   : > { %v202_v54 = vadd.f32 %v196_v24, %v192_v51 }
  0xf4   : > { %v215_v57 = vadd.f32 %v213_v53, %v202_v54  ;;  %v352_v53 = vperm.slane %v244_v22, 6 }
  0xf6   : > { %v228_v60 = vadd.f32 %v226_v56, %v215_v57  ;;  %v353_v56 = vmul.f32 %v352_v53, %v350_v21 }
  0xf8   : > { %v241_v61 = vadd.f32 %v239_v59, %v228_v60  ;;  %v360_v59 = vmul.f32 %v359_v47, %v357_v26  ;;  %v391_v6 = vpop.permute.xlu0 %390  ;;  %v747_v26 = vmov (%p424_p4), -inf  }
  0xf9   : > { %431 = vst.msk [vmem:[#allocation2] sm:$0x3] (%p424_p4), %vm430_vm0, %v747_v26 }
  0xfa   : > { %v243_v62 = vmax.f32 %v241_v61, 0.0 }
  0xfc   : > { %v250_v0 = vperm.slane %v243_v62, 0  ;;  %v261_v1 = vperm.slane %v243_v62, 1  ;;  %v268_v4 = vperm.slane %v243_v62, 2  ;;  %v275_v10 = vperm.slane %v243_v62, 3 }
  0xfd   : > { %v282_v13 = vperm.slane %v243_v62, 4  ;;  %v289_v17 = vperm.slane %v243_v62, 5  ;;  %v296_v20 = vperm.slane %v243_v62, 6  ;;  %v303_v25 = vperm.slane %v243_v62, 7 }
  0xfe   : > { %v251_v3 = vmul.f32 %v250_v0, %v248_v35  ;;  %v262_v9 = vmul.f32 %v261_v1, %v259_v40  ;;  %v269_v12 = vmul.f32 %v268_v4, %v266_v41  ;;  %v276_v16 = vmul.f32 %v275_v10, %v273_v42  ;;  %v366_v35 = vpop.permute.xlu1 %365  ;;  %v372_v40 = vpop.permute.xlu2 %371 }
  0xff   : > { %v283_v19 = vmul.f32 %v282_v13, %v280_v43  ;;  %v290_v24 = vmul.f32 %v289_v17, %v287_v44  ;;  %v297_v28 = vmul.f32 %v296_v20, %v294_v45  ;;  %v304_v32 = vmul.f32 %v303_v25, %v301_v46 }
 0x100   : > { %v256_v8 = vadd.f32 %v254_v39, %v251_v3  ;;  %v325_v41 = vmul.f32 %v324_v38, %v322_v55  ;;  %v332_v43 = vmul.f32 %v331_v37, %v329_v58  ;;  %v338_v44 = vperm.slane %v244_v22, 4 }
 0x102   : > { %v263_v11 = vadd.f32 %v262_v9, %v256_v8  ;;  %v339_v51 = vmul.f32 %v338_v44, %v336_v2 }
 0x104   : > { %v270_v15 = vadd.f32 %v269_v12, %v263_v11 }
 0x106   : > { %v277_v18 = vadd.f32 %v276_v16, %v270_v15  ;;  %v377_v46 = vpop.permute.xlu1 %376  ;;  %v384_v48 = vpop.permute.xlu2 %383 }
 0x108   : > { %v284_v23 = vadd.f32 %v283_v19, %v277_v18 }
 0x10a   : > { %v291_v27 = vadd.f32 %v290_v24, %v284_v23 }
 0x10c   : > { %v298_v31 = vadd.f32 %v297_v28, %v291_v27  ;;  %v748_v27 = vmov (%p424_p4), 0.0  }
 0x10d   : > { %432 = vst.msk [vmem:[#allocation3] sm:$0x3] (%p424_p4), %vm430_vm0, %v748_v27 }
 0x10e   : > { %v305_v34 = vadd.f32 %v304_v32, %v298_v31  ;;  %v398_v58 = vpop.permute.xlu1 %397  ;;  %v405_v3 = vpop.permute.xlu2 %404 }
 0x110   : > { %v312_v39 = vadd.f32 %v311_v33, %v305_v34 }
 0x112   : > { %v319_v42 = vadd.f32 %v318_v36, %v312_v39 }
 0x114   : > { %v326_v49 = vadd.f32 %v325_v41, %v319_v42 }
 0x116   : > { %v333_v45 = vadd.f32 %v332_v43, %v326_v49  ;;  %v412_v16 = vpop.permute.xlu1 %411  ;;  %v419_v20 = vpop.permute.xlu2 %418 }
 0x118   : > { %v340_v54 = vadd.f32 %v339_v51, %v333_v45 }
 0x11a   : > { %v347_v57 = vadd.f32 %v346_v52, %v340_v54 }
 0x11c   : > { %v354_v60 = vadd.f32 %v353_v56, %v347_v57 }
 0x11e   : > { %v361_v61 = vadd.f32 %v360_v59, %v354_v60 }
 0x120   : > { %v362_v62 = vmax.f32 %v361_v61, 0.0 }
 0x122   : > { %v368_v55 = vperm.slane %v362_v62, 0  ;;  %v379_v63 = vperm.slane %v362_v62, 1  ;;  %v386_v1 = vperm.slane %v362_v62, 2  ;;  %v393_v5 = vperm.slane %v362_v62, 3 }
 0x123   : > { %v400_v9 = vperm.slane %v362_v62, 4  ;;  %v407_v10 = vperm.slane %v362_v62, 5  ;;  %v414_v14 = vperm.slane %v362_v62, 6  ;;  %v421_v18 = vperm.slane %v362_v62, 7 }
 0x124   : > { %v369_v0 = vmul.f32 %v368_v55, %v366_v35  ;;  %v380_v4 = vmul.f32 %v379_v63, %v377_v46  ;;  %v387_v7 = vmul.f32 %v386_v1, %v384_v48  ;;  %v394_v12 = vmul.f32 %v393_v5, %v391_v6 }
 0x125   : > { %v401_v13 = vmul.f32 %v400_v9, %v398_v58  ;;  %v408_v17 = vmul.f32 %v407_v10, %v405_v3  ;;  %v415_v21 = vmul.f32 %v414_v14, %v412_v16  ;;  %v422_v23 = vmul.f32 %v421_v18, %v419_v20 }
 0x126   : > { %v374_v2 = vadd.f32 %v372_v40, %v369_v0 }
 0x128   : > { %v381_v8 = vadd.f32 %v380_v4, %v374_v2 }
 0x12a   : > { %v388_v11 = vadd.f32 %v387_v7, %v381_v8 }
 0x12c   : > { %v395_v15 = vadd.f32 %v394_v12, %v388_v11 }
 0x12e   : > { %v402_v19 = vadd.f32 %v401_v13, %v395_v15 }
 0x130   : > { %v409_v22 = vadd.f32 %v408_v17, %v402_v19  ;;  %429 = sbr.rel (!%p424_p4) target bundleno = 309 (0x135), region = 32 }
 0x132   : > { %v416_v24 = vadd.f32 %v415_v21, %v409_v22 }
 0x134   : > { %v423_v25 = vadd.f32 %v422_v23, %v416_v24 }
 0x135 PF: > { %p567_p5 = scmp.ne.s32.totalorder %s720_s9, 0 }
 0x137   : > { %435 = sbr.rel (%p567_p5) target bundleno = 682 (0x2aa), region = 36 }
 0x13c   : > { %vm437_vm1 = vcmask 58368   ;;  %v749_v29 = vmov 0   ;;  %v436_v30 = vld [vmem:[#allocation2] sm:$0x3]  ;;  %vm459_vm2 = vcmask 1024  }
 0x13d   : > { %v438_v28 = vsel %vm437_vm1, %v423_v25, -inf  ;;  %664 = vset.pattern.permute.xlu0 %v749_v29  ;;  %v442_v41 = vld [vmem:[#allocation3] sm:$0x3] }
 0x13e   : > { %439 = vmax.xlane.f32.xlu0 %v438_v28 }
 0x1b1   : > { %v440_v31 = vpop.xlane.xlu0 %439 }
 0x1b2   : > { %v441_v32 = vmax.f32 %v436_v30, %v440_v31 }
 0x1b4   : > { %v443_v33 = vsub.f32 %v436_v30, %v441_v32  ;;  %461 = vst.msk [vmem:[#allocation2] sm:$0x3] %vm459_vm2, %v441_v32  ;;  %449 = vperm.xlu0 %664, %v441_v32  }
 0x1b6   : > { %v444_v39 = vmul.f32 1.442695, %v443_v33 }
 0x226   : > { %v450_v34 = vpop.permute.xlu0 %449 }
 0x227   : > { %v452_v35 = vsub.f32 %v423_v25, %v450_v34 }
 0x229   : > { %v453_v36 = vmul.f32 1.442695, %v452_v35 }
 0x22b   : > { %665 = vpow2.f32 %v453_v36 }
 0x22c   : > { %667 = vpow2.f32 %v444_v39 }
 0x231   : > { %v666_v37 = vpop.eup %665 }
 0x232   : > { %v455_v38 = vsel %vm437_vm1, %v666_v37, 0.0  ;;  %v668_v40 = vpop.eup %667 }
 0x233   : > { %456 = vadd.xlane.f32.xlu1 %v455_v38  ;;  %v446_v42 = vmul.f32 %v668_v40, %v442_v41 }
 0x2a6   : > { %v457_v43 = vpop.xlane.xlu1 %456 }
 0x2a7   : > { %v458_v44 = vadd.f32 %v457_v43, %v446_v42 }
 0x2a9   : > { %460 = vst.msk [vmem:[#allocation3] sm:$0x3] %vm459_vm2, %v458_v44 }
 0x2aa PF: > { %p568_p6 = scmp.ne.s32.totalorder %s720_s9, 1 }
 0x2ac   : > { %465 = sbr.rel (%p568_p6) target bundleno = 828 (0x33c), region = 40 }
 0x2b1   : > { %v475_v49 = vld [vmem:[#allocation3] sm:$0x3]  ;;  %v750_v50 = vmov 0   ;;  %v466_v51 = vld [vmem:[#allocation2] sm:$0x3]  ;;  %vm496_vm7 = vcmask 58368  }
 0x2b2   : > { %669 = vset.pattern.permute.xlu0 %v750_v50 }
 0x2b3   : > { %478 = vperm.xlu0 %669, %v475_v49  }
 0x2bb   : > { %469 = vperm.xlu0 %669, %v466_v51  }
 0x325   : > { %v479_v45 = vpop.permute.xlu0 %478 }
 0x326   : > { %670 = vrcp.f32 %v479_v45  ;;  %v492_v48 = vand.u32 2147483648, %v479_v45  ;;  %vm486_vm4 = vweird.f32 %v479_v45  ;;  %v490_v60 = vand.u32 2147483647, %v479_v45 }
 0x328   : > { %v493_v62 = vor.u32 1.1754944e-38, %v492_v48  ;;  %vm491_vm6 = vcmp.eq.f32.partialorder %v490_v60, 8.507059e+37 }
 0x32c   : > { %v671_v52 = vpop.eup %670 }
 0x32d   : > { %v482_v53 = vmul.f32 %v671_v52, %v479_v45  ;;  %v470_v54 = vpop.permute.xlu0 %469  ;;  %vm487_vm3 = vweird.f32 %v671_v52 }
 0x32e   : > { %v472_v46 = vsub.f32 %v423_v25, %v470_v54  ;;  %vm488_vm5 = vmor %vm486_vm4, %vm487_vm3 }
 0x32f   : > { %v483_v47 = vsub.f32 1.0, %v482_v53 }
 0x330   : > { %v473_v56 = vmul.f32 1.442695, %v472_v46 }
 0x331   : > { %v484_v57 = vmul.f32 %v671_v52, %v483_v47 }
 0x332   : > { %672 = vpow2.f32 %v473_v56 }
 0x333   : > { %v485_v59 = vadd.f32 %v671_v52, %v484_v57 }
 0x335   : > { %v489_v61 = vsel %vm488_vm5, %v671_v52, %v485_v59 }
 0x336   : > { %v494_v63 = vsel %vm491_vm6, %v493_v62, %v489_v61 }
 0x338   : > { %v673_v55 = vpop.eup %672 }
 0x339   : > { %v495_v58 = vmul.f32 %v673_v55, %v494_v63 }
 0x33b   : > { %497 = vst.msk [vmem:[#allocation4] sm:$0x3] %vm496_vm7, %v495_v58 }
 0x33c PF: > { %p578_p7 = scmp.eq.s32.totalorder %s562_s12, 1  ;;  %s508_s26 = sshll.u32 %s851_s2, 4  ;;  %s509_s26 = int_to_ptr.hbm [resolvable:$true] %s508_s26 }
 0x33d   : > { %s751_s27 = smov [#allocation4]  }
 0x33e   : > { %s506_s28 = sshll.u32 %s751_s27, 4  ;;  %s507_s28 = int_to_ptr.vmem [resolvable:$true] %s506_s28 }
 0x33f   : > { %575 = dma.vmem_to_hbm [thread:$0]  (%p578_p7), %s507_s28, 32, %s509_s26, [#allocation5]  }
 0x340   : > { %715 = dma.done.wait (%p578_p7), [#allocation5], 32  }
 0x341   : > { %717 = vsyncadd (%p578_p7), [#allocation5], 4294967264 }
 0x342 PF: > { %s13_s11 = sadd.s32 1, %s728_s11   ;;  %s852_s9 = smov %s724_s10 }
 0x343   : > { %p10_p8 = scmp.ge.s32.totalorder %s13_s11, 4   ;;  %s853_s10 = smov %s855_s13 }
 0x345   :  { %12 = sbr.rel (!%p10_p8) target bundleno = 2 (0x2), region = 68 }
 0x34a   :  { %522 = vsyncpa [#allocation5], 1 }
 0x34b   :  { %524 = vsyncpa [#allocation5 + $0x1], 1 }

</bundles_post_ra>
